<compile_context>
chip_gen: v7x
topology: tpu7x:2x2x1
jax: 0.10.0
libtpu: 0.0.40
codegen_flags: <defaults>
</compile_context>

<pallas_src>
import functools

import jax
import jax.numpy as jnp
from jax import lax
from jax.experimental import pallas as pl
from jax.experimental.pallas import tpu as pltpu

EPS = 1e-5

OFF3x3 = tuple((dh, dw) for dh in range(3) for dw in range(3))   # tap t = 3*dh + dw
OFF2x2 = ((0, 0), (0, 1), (1, 0), (1, 1))                        # tap t = 2*bi + bj


# ------------------------------ kernel helpers ------------------------------ #

def _bn_relu_to_pad(x_ref, scale_ref, shift_ref, pad_ref):
    """relu(x*scale + shift) written into a zero-bordered VMEM pad scratch.

    Only the 1-pixel border slices are zeroed (the interior is stored once); the
    border is re-zeroed every grid step because the scratch persists per-core.
    """
    nb, hin, win, c = x_ref.shape
    hp, wp = pad_ref.shape[1], pad_ref.shape[2]
    a = jnp.maximum(
        x_ref[...].astype(jnp.float32) * scale_ref[...] + shift_ref[...], 0.0)
    zrow = jnp.zeros((nb, 1, wp, c), pad_ref.dtype)
    zcol = jnp.zeros((nb, hp, 1, c), pad_ref.dtype)
    pad_ref[:, 0:1, :, :] = zrow
    pad_ref[:, :, 0:1, :] = zcol
    if hp == hin + 2:                 # bottom/right pad only in the stride-1 layout
        pad_ref[:, hin + 1:hin + 2, :, :] = zrow
    if wp == win + 2:
        pad_ref[:, :, win + 1:win + 2, :] = zcol
    pad_ref[:, 1:1 + hin, 1:1 + win, :] = a.astype(pad_ref.dtype)


def _taps_matmul(pad_ref, w_ref, offsets, ho, wo, keep_tap=None):
    """acc[m, cout] = sum_t dot(tap_t, W[t]); taps are static slices of VMEM scratch.

    # TODO(synk): a single deeper-K dot over an in-VMEM im2col slab (or
    # pltpu.roll-based W shifts) would drop the per-tap accumulate adds; per-tap
    # dots are kept because that lowering is proven at sub-(8,128) channel widths.
    """
    nb, k = pad_ref.shape[0], pad_ref.shape[-1]
    m = nb * ho * wo
    acc = None
    kept = None
    for t, (dh, dw) in enumerate(offsets):
        tap = pad_ref[:, dh:dh + ho, dw:dw + wo, :].reshape(m, k)
        if t == keep_tap:
            kept = tap
        d = jnp.dot(tap, w_ref[t], preferred_element_type=jnp.float32)
        acc = d if acc is None else acc + d
    return acc, kept


def _write_stats(stats_ref, acc):
    """Per-channel [sum, sum-of-squares] of the f32 accumulator (for BN2 stats)."""
    stats_ref[0, 0:1, :] = jnp.sum(acc, axis=0, keepdims=True)
    stats_ref[0, 1:2, :] = jnp.sum(acc * acc, axis=0, keepdims=True)


# --------------------------------- kernels ----------------------------------- #

def _conv1_sc_kernel(x_ref, scale_ref, shift_ref, w_ref, wsc_ref,
                     c1_ref, sc_ref, stats_ref, pad_ref, *, offsets, ho, wo, sc_tap):
    """Fused bn1 + relu + pad + conv1 (3x3) + 1x1 shortcut + BN2 partial stats."""
    _bn_relu_to_pad(x_ref, scale_ref, shift_ref, pad_ref)
    acc, sc_in = _taps_matmul(pad_ref, w_ref, offsets, ho, wo, keep_tap=sc_tap)
    nb = x_ref.shape[0]
    c1_ref[...] = acc.reshape(nb, ho, wo, c1_ref.shape[-1]).astype(c1_ref.dtype)
    sc = jnp.dot(sc_in, wsc_ref[...], preferred_element_type=jnp.float32)
    sc_ref[...] = sc.reshape(nb, ho, wo, sc_ref.shape[-1]).astype(sc_ref.dtype)
    _write_stats(stats_ref, acc)


def _conv1_kernel(x_ref, scale_ref, shift_ref, w_ref,
                  c1_ref, stats_ref, pad_ref, *, offsets, ho, wo):
    """Fused bn1 + relu + pad + conv1 (3x3) + BN2 partial stats (identity shortcut)."""
    _bn_relu_to_pad(x_ref, scale_ref, shift_ref, pad_ref)
    acc, _ = _taps_matmul(pad_ref, w_ref, offsets, ho, wo)
    nb = x_ref.shape[0]
    c1_ref[...] = acc.reshape(nb, ho, wo, c1_ref.shape[-1]).astype(c1_ref.dtype)
    _write_stats(stats_ref, acc)


def _conv2_kernel(c1_ref, scale_ref, shift_ref, w_ref, res_ref,
                  out_ref, pad_ref, *, offsets, ho, wo):
    """Fused bn2 + relu + pad + conv2 (3x3, stride 1) + residual add."""
    _bn_relu_to_pad(c1_ref, scale_ref, shift_ref, pad_ref)
    acc, _ = _taps_matmul(pad_ref, w_ref, offsets, ho, wo)
    nb = c1_ref.shape[0]
    cout = out_ref.shape[-1]
    out = acc + res_ref[...].astype(jnp.float32).reshape(nb * ho * wo, cout)
    out_ref[...] = out.reshape(nb, ho, wo, cout).astype(out_ref.dtype)


# --------------------------- tile / VMEM sizing ------------------------------ #

def _vmem_limit_bytes():
    """~3/4 of physical VMEM: ~96 MiB on 128-MiB v5e/v6e, ~48 MiB on 64-MiB v7x;
    falls back to a conservative 48 MiB if the hardware query is unavailable."""
    cap = 64 * 1024 * 1024
    try:
        info = pltpu.get_tpu_info()
        cap = int(getattr(info, "vmem_capacity_bytes", cap)) or cap
    except Exception:
        pass
    return (cap * 3) // 4


def _pick_nb(n, bytes_per_image, budget_bytes):
    """Largest batch-tile (divisor of n) fitting the VMEM budget, while keeping the
    grid length >= 2 so both v7x TensorCores get work under ("parallel",)."""
    best = 1
    for nb in range(1, n + 1):
        if n % nb:
            continue
        if n >= 2 and n // nb < 2:
            continue
        if nb * bytes_per_image <= budget_bytes:
            best = nb
    return best


# ------------------------------ pallas wrappers ------------------------------ #

def _conv1_call(x_in, scale, shift, w_taps, w_sc, sc_tap, *,
                ho, wo, pad_hw, offsets, compute_dtype):
    n, hin, win, k = x_in.shape
    t, _, cout = w_taps.shape
    csc = 0 if w_sc is None else w_sc.shape[-1]
    cbytes = jnp.dtype(compute_dtype).itemsize

    per_img = (2 * hin * win * k * x_in.dtype.itemsize          # input (dbl-buffered)
               + pad_hw[0] * pad_hw[1] * k * cbytes             # pad scratch
               + 2 * ho * wo * (cout + csc) * cbytes)           # outputs (dbl-buffered)
    vlim = _vmem_limit_bytes()
    nb = _pick_nb(n, per_img, vlim // 2)
    g = n // nb

    scale2d = jnp.asarray(scale, jnp.float32).reshape(1, k)
    shift2d = jnp.asarray(shift, jnp.float32).reshape(1, k)

    x_spec = pl.BlockSpec((nb, hin, win, k), lambda i: (i, 0, 0, 0))
    s_spec = pl.BlockSpec((1, k), lambda i: (0, 0))
    w_spec = pl.BlockSpec((t, k, cout), lambda i: (0, 0, 0))
    c1_spec = pl.BlockSpec((nb, ho, wo, cout), lambda i: (i, 0, 0, 0))
    st_spec = pl.BlockSpec((1, 2, cout), lambda i: (i, 0, 0))
    c1_shape = jax.ShapeDtypeStruct((n, ho, wo, cout), compute_dtype)
    st_shape = jax.ShapeDtypeStruct((g, 2, cout), jnp.float32)
    scratch = [pltpu.VMEM((nb, pad_hw[0], pad_hw[1], k), compute_dtype)]
    cparams = pltpu.CompilerParams(dimension_semantics=("parallel",),
                                   vmem_limit_bytes=vlim)
    # TODO(synk): flatten (wo, Cout) into a lane-dense trailing dim once Cout*wo is a
    # multiple of 128 to avoid masked partial stores on narrow-channel stages.

    if w_sc is not None:
        kern = functools.partial(_conv1_sc_kernel, offsets=offsets, ho=ho, wo=wo,
                                 sc_tap=sc_tap)
        sc_spec = pl.BlockSpec((nb, ho, wo, csc), lambda i: (i, 0, 0, 0))
        sc_shape = jax.ShapeDtypeStruct((n, ho, wo, csc), compute_dtype)
        wsc_spec = pl.BlockSpec((k, csc), lambda i: (0, 0))
        return pl.pallas_call(
            kern, grid=(g,),
            in_specs=[x_spec, s_spec, s_spec, w_spec, wsc_spec],
            out_specs=(c1_spec, sc_spec, st_spec),
            out_shape=(c1_shape, sc_shape, st_shape),
            scratch_shapes=scratch,
            compiler_params=cparams,
        )(x_in, scale2d, shift2d, w_taps, w_sc)

    kern = functools.partial(_conv1_kernel, offsets=offsets, ho=ho, wo=wo)
    return pl.pallas_call(
        kern, grid=(g,),
        in_specs=[x_spec, s_spec, s_spec, w_spec],
        out_specs=(c1_spec, st_spec),
        out_shape=(c1_shape, st_shape),
        scratch_shapes=scratch,
        compiler_params=cparams,
    )(x_in, scale2d, shift2d, w_taps)


def _conv2_call(c1, scale, shift, w_taps, residual, *, compute_dtype, out_dtype):
    n, ho, wo, c = c1.shape
    t, _, cout = w_taps.shape
    cbytes = jnp.dtype(compute_dtype).itemsize

    per_img = (2 * ho * wo * c * c1.dtype.itemsize
               + 2 * ho * wo * cout * residual.dtype.itemsize
               + (ho + 2) * (wo + 2) * c * cbytes
               + 2 * ho * wo * cout * jnp.dtype(out_dtype).itemsize)
    vlim = _vmem_limit_bytes()
    nb = _pick_nb(n, per_img, vlim // 2)
    g = n // nb

    scale2d = jnp.asarray(scale, jnp.float32).reshape(1, c)
    shift2d = jnp.asarray(shift, jnp.float32).reshape(1, c)

    c1_spec = pl.BlockSpec((nb, ho, wo, c), lambda i: (i, 0, 0, 0))
    s_spec = pl.BlockSpec((1, c), lambda i: (0, 0))
    w_spec = pl.BlockSpec((t, c, cout), lambda i: (0, 0, 0))
    res_spec = pl.BlockSpec((nb, ho, wo, cout), lambda i: (i, 0, 0, 0))
    out_spec = pl.BlockSpec((nb, ho, wo, cout), lambda i: (i, 0, 0, 0))

    kern = functools.partial(_conv2_kernel, offsets=OFF3x3, ho=ho, wo=wo)
    return pl.pallas_call(
        kern, grid=(g,),
        in_specs=[c1_spec, s_spec, s_spec, w_spec, res_spec],
        out_specs=out_spec,
        out_shape=jax.ShapeDtypeStruct((n, ho, wo, cout), out_dtype),
        scratch_shapes=[pltpu.VMEM((nb, ho + 2, wo + 2, c), compute_dtype)],
        compiler_params=pltpu.CompilerParams(dimension_semantics=("parallel",),
                                             vmem_limit_bytes=vlim),
    )(c1, scale2d, shift2d, w_taps, residual)


# --------------------------- layout / weight glue ---------------------------- #

def _bn_scale_shift(x_nhwc, gamma, beta):
    """Training-mode BatchNorm2d folded to a per-channel scale/shift (f32)."""
    mean = jnp.mean(x_nhwc, axis=(0, 1, 2))
    var = jnp.mean(jnp.square(x_nhwc - mean), axis=(0, 1, 2))   # biased variance
    scale = gamma * lax.rsqrt(var + EPS)
    return scale, beta - mean * scale


def _space_to_depth2(x):
    """(N, H, W, C) -> (N, H/2, W/2, 4C); channel group 2*pi+pj holds pixel (pi, pj)."""
    n, h, w, c = x.shape
    x = x.reshape(n, h // 2, 2, w // 2, 2, c)
    x = jnp.transpose(x, (0, 1, 3, 2, 4, 5))
    return x.reshape(n, h // 2, w // 2, 4 * c)


def _fold_w3x3(w_oihw, dtype):
    """(Cout, Cin, 3, 3) -> (9, Cin, Cout); tap index t = 3*dh + dw."""
    cout, cin = w_oihw.shape[0], w_oihw.shape[1]
    return jnp.transpose(w_oihw, (2, 3, 1, 0)).reshape(9, cin, cout).astype(dtype)


def _fold_w3x3_s2d(w_oihw, dtype):
    """(Cout, Cin, 3, 3) -> (4, 4*Cin, Cout) for the stride-2 conv over s2d(x).

    With a 1-block top/left zero pad, tap t = 2*bi+bj reads P[i+bi, j+bj]; row
    (2*pi+pj)*Cin + ci of W[t] holds w[co, ci, 2*bi+pi-1, 2*bj+pj-1] (zero where
    the 3x3 kernel has no such tap)."""
    cout, cin = w_oihw.shape[0], w_oihw.shape[1]
    w = jnp.zeros((2, 2, 4, cin, cout), jnp.float32)
    for bi in range(2):
        for bj in range(2):
            for pi in range(2):
                for pj in range(2):
                    dh, dw = 2 * bi + pi - 1, 2 * bj + pj - 1
                    if 0 <= dh < 3 and 0 <= dw < 3:
                        w = w.at[bi, bj, 2 * pi + pj].set(
                            jnp.transpose(w_oihw[:, :, dh, dw], (1, 0)))
    return w.reshape(4, 4 * cin, cout).astype(dtype)


def _fold_wsc(w_oihw, dtype):
    """(Cout, Cin, 1, 1) -> (Cin, Cout) for the stride-1 1x1 shortcut."""
    return jnp.transpose(w_oihw[:, :, 0, 0], (1, 0)).astype(dtype)


def _fold_wsc_s2d(w_oihw, dtype):
    """Embed the 1x1 shortcut weights in the (4*Cin, Cout) contraction of tap (1,1):
    only channel group (pi,pj)=(0,0) is non-zero, so the shortcut reuses a tap that
    is already resident in VMEM."""
    cout, cin = w_oihw.shape[0], w_oihw.shape[1]
    w = jnp.zeros((4, cin, cout), jnp.float32)
    w = w.at[0].set(jnp.transpose(w_oihw[:, :, 0, 0], (1, 0)))
    return w.reshape(4 * cin, cout).astype(dtype)


# ------------------------------ PreActBlock fwd ------------------------------ #

def preact_block_forward_nhwc(x, params, stride, compute_dtype=jnp.bfloat16):
    """PreActBlock forward, channels-last. x: (N, H, W, Cin) float32."""
    assert stride in (1, 2), "CIFAR PreActResNet uses stride 1 or 2"
    n, h, w, cin = x.shape
    has_sc = "w_sc" in params

    # BN1 folded to per-channel scale/shift; the normalize/relu/pad happen inside
    # the conv1 kernel (the padded activation never hits HBM).
    scale1, shift1 = _bn_scale_shift(x, params["gamma1"], params["beta1"])

    if stride == 1:
        ho, wo = h, w
        x_in, scale_in, shift_in = x, scale1, shift1
        offsets, pad_hw, sc_tap = OFF3x3, (h + 2, w + 2), 4      # centre tap = a1[i,j]
        w1 = _fold_w3x3(params["w1"], compute_dtype)
        wsc = _fold_wsc(params["w_sc"], compute_dtype) if has_sc else None
    else:
        assert h % 2 == 0 and w % 2 == 0
        ho, wo = h // 2, w // 2
        # Space-to-depth(2) on the raw input (commutes with per-channel BN/ReLU):
        # the strided 3x3 becomes a 4-tap stride-1 conv with K = 4*Cin.
        # TODO(synk): gather the stride-2 taps in-kernel (strided pl.ds reads) to
        # also drop this one remaining XLA relayout pass over x.
        x_in = _space_to_depth2(x)
        scale_in, shift_in = jnp.tile(scale1, 4), jnp.tile(shift1, 4)
        offsets, pad_hw, sc_tap = OFF2x2, (ho + 1, wo + 1), 3    # tap (1,1) grp 0 = a1[2i,2j]
        w1 = _fold_w3x3_s2d(params["w1"], compute_dtype)
        wsc = _fold_wsc_s2d(params["w_sc"], compute_dtype) if has_sc else None

    if has_sc:
        c1, sc, stats = _conv1_call(
            x_in, scale_in, shift_in, w1, wsc, sc_tap,
            ho=ho, wo=wo, pad_hw=pad_hw, offsets=offsets, compute_dtype=compute_dtype)
    else:
        c1, stats = _conv1_call(
            x_in, scale_in, shift_in, w1, None, None,
            ho=ho, wo=wo, pad_hw=pad_hw, offsets=offsets, compute_dtype=compute_dtype)
        sc = x if stride == 1 else x[:, ::stride, ::stride, :]   # identity shortcut

    # BN2 scale/shift from conv1's in-kernel partial sums (no extra pass over c1).
    tot = jnp.sum(stats, axis=0)
    cnt = jnp.asarray(n * ho * wo, jnp.float32)
    mean2 = tot[0] / cnt
    var2 = jnp.maximum(tot[1] / cnt - mean2 * mean2, 0.0)        # biased batch variance
    scale2 = params["gamma2"] * lax.rsqrt(var2 + EPS)
    shift2 = params["beta2"] - mean2 * scale2

    w2 = _fold_w3x3(params["w2"], compute_dtype)
    return _conv2_call(c1, scale2, shift2, w2, sc,
                       compute_dtype=compute_dtype, out_dtype=jnp.float32)


def preact_block_forward(x_nchw, params, stride, compute_dtype=jnp.bfloat16):
    """NCHW interface matching the PyTorch module."""
    # TODO(synk): drop the boundary transposes if the surrounding model is NHWC.
    x = jnp.transpose(x_nchw, (0, 2, 3, 1)).astype(jnp.float32)
    out = preact_block_forward_nhwc(x, params, stride, compute_dtype)
    return jnp.transpose(out, (0, 3, 1, 2))


# ----------------------------- pure-JAX reference ---------------------------- #

def _ref_bn(x_nchw, gamma, beta):
    mean = jnp.mean(x_nchw, axis=(0, 2, 3), keepdims=True)
    var = jnp.mean(jnp.square(x_nchw - mean), axis=(0, 2, 3), keepdims=True)
    return ((x_nchw - mean) / jnp.sqrt(var + EPS) * gamma.reshape(1, -1, 1, 1)
            + beta.reshape(1, -1, 1, 1))


def preact_block_reference(x, params, stride):
    dn = ("NCHW", "OIHW", "NCHW")
    a1 = jax.nn.relu(_ref_bn(x, params["gamma1"], params["beta1"]))
    if "w_sc" in params:
        sc = lax.conv_general_dilated(a1, params["w_sc"], (stride, stride), "VALID",
                                      dimension_numbers=dn)
    else:
        sc = x
    c1 = lax.conv_general_dilated(a1, params["w1"], (stride, stride),
                                  ((1, 1), (1, 1)), dimension_numbers=dn)
    a2 = jax.nn.relu(_ref_bn(c1, params["gamma2"], params["beta2"]))
    c2 = lax.conv_general_dilated(a2, params["w2"], (1, 1), ((1, 1), (1, 1)),
                                  dimension_numbers=dn)
    return c2 + sc


# ----------------------------------- main ------------------------------------ #

def _make_params(key, in_planes, planes, stride):
    k1, k2, k3, k4, k5, k6, k7 = jax.random.split(key, 7)
    params = {
        "gamma1": 1.0 + 0.1 * jax.random.normal(k4, (in_planes,), jnp.float32),
        "beta1": 0.1 * jax.random.normal(k5, (in_planes,), jnp.float32),
        "gamma2": 1.0 + 0.1 * jax.random.normal(k6, (planes,), jnp.float32),
        "beta2": 0.1 * jax.random.normal(k7, (planes,), jnp.float32),
        "w1": 0.1 * jax.random.normal(k1, (planes, in_planes, 3, 3), jnp.float32),
        "w2": 0.1 * jax.random.normal(k2, (planes, planes, 3, 3), jnp.float32),
    }
    if stride != 1 or in_planes != planes:
        params["w_sc"] = 0.1 * jax.random.normal(
            k3, (planes, in_planes, 1, 1), jnp.float32)
    return params


if __name__ == "__main__":
    key = jax.random.PRNGKey(0)
    kx, kp, kx2, kp2 = jax.random.split(key, 4)

    # Config A: stride-2 downsampling block with 1x1-conv shortcut.
    N, in_planes, planes, H, W, stride = 2, 4, 8, 16, 16, 2
    x = jax.random.normal(kx, (N, in_planes, H, W), jnp.float32)
    params = _make_params(kp, in_planes, planes, stride)

    out = jax.block_until_ready(
        preact_block_forward(x, params, stride, compute_dtype=jnp.float32))
    ref = jax.block_until_ready(preact_block_reference(x, params, stride))
    assert out.shape == ref.shape, (out.shape, ref.shape)
    err = float(jnp.max(jnp.abs(out - ref)))
    assert err < 1e-4, err

    # Same block on the default bf16 path (bf16 matmul operands + intermediate
    # activations; f32 accumulation and BN statistics).
    out_bf16 = jax.block_until_ready(preact_block_forward(x, params, stride))
    err_bf16 = float(jnp.max(jnp.abs(out_bf16 - ref)))
    assert err_bf16 < 1e-1, err_bf16

    # Config B: stride-1 identity-shortcut block.
    N2, planes2, H2, W2 = 2, 8, 16, 16
    x2 = jax.random.normal(kx2, (N2, planes2, H2, W2), jnp.float32)
    params2 = _make_params(kp2, planes2, planes2, 1)
    out2 = jax.block_until_ready(
        preact_block_forward(x2, params2, 1, compute_dtype=jnp.float32))
    ref2 = jax.block_until_ready(preact_block_reference(x2, params2, 1))
    assert out2.shape == ref2.shape, (out2.shape, ref2.shape)
    err2 = float(jnp.max(jnp.abs(out2 - ref2)))
    assert err2 < 1e-4, err2

    print("KERNEL_OK")
</pallas_src>

<mosaic_0001>
module attributes {stable_mosaic.version = 11 : i64} {
  func.func @_conv1_sc_kernel(%arg0: i32, %arg1: memref<1x8x8x16xf32, #tpu.memory_space<vmem>>, %arg2: memref<1x16xf32, #tpu.memory_space<vmem>>, %arg3: memref<1x16xf32, #tpu.memory_space<vmem>>, %arg4: memref<4x16x8xf32, #tpu.memory_space<vmem>>, %arg5: memref<16x8xf32, #tpu.memory_space<vmem>>, %arg6: memref<1x8x8x8xf32, #tpu.memory_space<vmem>>, %arg7: memref<1x8x8x8xf32, #tpu.memory_space<vmem>>, %arg8: memref<1x2x8xf32, #tpu.memory_space<vmem>>, %arg9: memref<1x9x9x16xf32, #tpu.memory_space<vmem>>) attributes {dimension_semantics = [#tpu.dimension_semantics<parallel>], iteration_bounds = array<i64: 2>, scalar_prefetch = 0 : i64, scratch_operands = 1 : i64, tpu.core_type = #tpu.core_type<tc>, window_params = [{transform_indices = @transform_0, window_bounds = array<i64: 1, 8, 8, 16>}, {pipeline_mode = #tpu.pipeline_mode<synchronous>, transform_indices = @transform_1, window_bounds = array<i64: 1, 16>}, {pipeline_mode = #tpu.pipeline_mode<synchronous>, transform_indices = @transform_2, window_bounds = array<i64: 1, 16>}, {pipeline_mode = #tpu.pipeline_mode<synchronous>, transform_indices = @transform_3, window_bounds = array<i64: 4, 16, 8>}, {pipeline_mode = #tpu.pipeline_mode<synchronous>, transform_indices = @transform_4, window_bounds = array<i64: 16, 8>}, {transform_indices = @transform_5, window_bounds = array<i64: 1, 8, 8, 8>}, {transform_indices = @transform_6, window_bounds = array<i64: 1, 8, 8, 8>}, {transform_indices = @transform_7, window_bounds = array<i64: 1, 2, 8>}]} {
    %c0 = arith.constant 0 : index
    %c0_0 = arith.constant 0 : index
    %c0_1 = arith.constant 0 : index
    %c0_2 = arith.constant 0 : index
    %0 = vector.load %arg1[%c0, %c0_0, %c0_1, %c0_2] : memref<1x8x8x16xf32, #tpu.memory_space<vmem>>, vector<1x8x8x16xf32>
    %c0_3 = arith.constant 0 : index
    %c0_4 = arith.constant 0 : index
    %1 = vector.load %arg2[%c0_3, %c0_4] : memref<1x16xf32, #tpu.memory_space<vmem>>, vector<1x16xf32>
    %2 = vector.shape_cast %1 : vector<1x16xf32> to vector<1x1x1x16xf32>
    %3 = vector.broadcast %2 : vector<1x1x1x16xf32> to vector<1x8x8x16xf32>
    %4 = arith.mulf %0, %3 : vector<1x8x8x16xf32>
    %c0_5 = arith.constant 0 : index
    %c0_6 = arith.constant 0 : index
    %5 = vector.load %arg3[%c0_5, %c0_6] : memref<1x16xf32, #tpu.memory_space<vmem>>, vector<1x16xf32>
    %6 = vector.shape_cast %5 : vector<1x16xf32> to vector<1x1x1x16xf32>
    %7 = vector.broadcast %6 : vector<1x1x1x16xf32> to vector<1x8x8x16xf32>
    %8 = arith.addf %4, %7 : vector<1x8x8x16xf32>
    %cst = arith.constant 0.000000e+00 : f32
    %9 = vector.broadcast %cst : f32 to vector<1x8x8x16xf32>
    %10 = arith.maximumf %8, %9 : vector<1x8x8x16xf32>
    %cst_7 = arith.constant 0.000000e+00 : f32
    %11 = vector.broadcast %cst_7 : f32 to vector<1x1x9x16xf32>
    %cst_8 = arith.constant 0.000000e+00 : f32
    %12 = vector.broadcast %cst_8 : f32 to vector<1x9x1x16xf32>
    %c0_9 = arith.constant 0 : index
    %c0_10 = arith.constant 0 : index
    %c0_11 = arith.constant 0 : index
    %c0_12 = arith.constant 0 : index
    %13 = vector.load %arg9[%c0_9, %c0_10, %c0_11, %c0_12] : memref<1x9x9x16xf32, #tpu.memory_space<vmem>>, vector<1x1x9x16xf32>
    tpu.vector_store %arg9[%c0_9, %c0_10, %c0_11, %c0_12], %11 {strides = array<i32>} : memref<1x9x9x16xf32, #tpu.memory_space<vmem>>, vector<1x1x9x16xf32>,
    %c0_13 = arith.constant 0 : index
    %c0_14 = arith.constant 0 : index
    %c0_15 = arith.constant 0 : index
    %c0_16 = arith.constant 0 : index
    %14 = vector.load %arg9[%c0_13, %c0_14, %c0_15, %c0_16] : memref<1x9x9x16xf32, #tpu.memory_space<vmem>>, vector<1x9x1x16xf32>
    tpu.vector_store %arg9[%c0_13, %c0_14, %c0_15, %c0_16], %12 {strides = array<i32>} : memref<1x9x9x16xf32, #tpu.memory_space<vmem>>, vector<1x9x1x16xf32>,
    %c0_17 = arith.constant 0 : index
    %c1 = arith.constant 1 : index
    %c1_18 = arith.constant 1 : index
    %c0_19 = arith.constant 0 : index
    %15 = vector.load %arg9[%c0_17, %c1, %c1_18, %c0_19] : memref<1x9x9x16xf32, #tpu.memory_space<vmem>>, vector<1x8x8x16xf32>
    tpu.vector_store %arg9[%c0_17, %c1, %c1_18, %c0_19], %10 {strides = array<i32>} : memref<1x9x9x16xf32, #tpu.memory_space<vmem>>, vector<1x8x8x16xf32>,
    %c0_20 = arith.constant 0 : index
    %c0_21 = arith.constant 0 : index
    %c0_22 = arith.constant 0 : index
    %c0_23 = arith.constant 0 : index
    %16 = vector.load %arg9[%c0_20, %c0_21, %c0_22, %c0_23] : memref<1x9x9x16xf32, #tpu.memory_space<vmem>>, vector<1x8x8x16xf32>
    %17 = vector.shape_cast %16 : vector<1x8x8x16xf32> to vector<64x16xf32>
    %c0_24 = arith.constant 0 : index
    %c0_25 = arith.constant 0 : index
    %c0_26 = arith.constant 0 : index
    %18 = vector.load %arg4[%c0_24, %c0_25, %c0_26] : memref<4x16x8xf32, #tpu.memory_space<vmem>>, vector<1x16x8xf32>
    %19 = vector.shape_cast %18 : vector<1x16x8xf32> to vector<16x8xf32>
    %cst_27 = arith.constant dense<0.000000e+00> : vector<64x8xf32>
    %20 = tpu.matmul %17, %19, %cst_27 {dimension_numbers = #tpu.dot_dimension_numbers<[1], [0], [0], [1], [0, 0, 1, 1], [], []>} : vector<64x16xf32>, vector<16x8xf32>, vector<64x8xf32> -> vector<64x8xf32>
    %c0_28 = arith.constant 0 : index
    %c0_29 = arith.constant 0 : index
    %c1_30 = arith.constant 1 : index
    %c0_31 = arith.constant 0 : index
    %21 = vector.load %arg9[%c0_28, %c0_29, %c1_30, %c0_31] : memref<1x9x9x16xf32, #tpu.memory_space<vmem>>, vector<1x8x8x16xf32>
    %22 = vector.shape_cast %21 : vector<1x8x8x16xf32> to vector<64x16xf32>
    %c1_32 = arith.constant 1 : index
    %c0_33 = arith.constant 0 : index
    %c0_34 = arith.constant 0 : index
    %23 = vector.load %arg4[%c1_32, %c0_33, %c0_34] : memref<4x16x8xf32, #tpu.memory_space<vmem>>, vector<1x16x8xf32>
    %24 = vector.shape_cast %23 : vector<1x16x8xf32> to vector<16x8xf32>
    %cst_35 = arith.constant dense<0.000000e+00> : vector<64x8xf32>
    %25 = tpu.matmul %22, %24, %cst_35 {dimension_numbers = #tpu.dot_dimension_numbers<[1], [0], [0], [1], [0, 0, 1, 1], [], []>} : vector<64x16xf32>, vector<16x8xf32>, vector<64x8xf32> -> vector<64x8xf32>
    %26 = arith.addf %20, %25 : vector<64x8xf32>
    %c0_36 = arith.constant 0 : index
    %c1_37 = arith.constant 1 : index
    %c0_38 = arith.constant 0 : index
    %c0_39 = arith.constant 0 : index
    %27 = vector.load %arg9[%c0_36, %c1_37, %c0_38, %c0_39] : memref<1x9x9x16xf32, #tpu.memory_space<vmem>>, vector<1x8x8x16xf32>
    %28 = vector.shape_cast %27 : vector<1x8x8x16xf32> to vector<64x16xf32>
    %c2 = arith.constant 2 : index
    %c0_40 = arith.constant 0 : index
    %c0_41 = arith.constant 0 : index
    %29 = vector.load %arg4[%c2, %c0_40, %c0_41] : memref<4x16x8xf32, #tpu.memory_space<vmem>>, vector<1x16x8xf32>
    %30 = vector.shape_cast %29 : vector<1x16x8xf32> to vector<16x8xf32>
    %cst_42 = arith.constant dense<0.000000e+00> : vector<64x8xf32>
    %31 = tpu.matmul %28, %30, %cst_42 {dimension_numbers = #tpu.dot_dimension_numbers<[1], [0], [0], [1], [0, 0, 1, 1], [], []>} : vector<64x16xf32>, vector<16x8xf32>, vector<64x8xf32> -> vector<64x8xf32>
    %32 = arith.addf %26, %31 : vector<64x8xf32>
    %c0_43 = arith.constant 0 : index
    %c1_44 = arith.constant 1 : index
    %c1_45 = arith.constant 1 : index
    %c0_46 = arith.constant 0 : index
    %33 = vector.load %arg9[%c0_43, %c1_44, %c1_45, %c0_46] : memref<1x9x9x16xf32, #tpu.memory_space<vmem>>, vector<1x8x8x16xf32>
    %34 = vector.shape_cast %33 : vector<1x8x8x16xf32> to vector<64x16xf32>
    %c3 = arith.constant 3 : index
    %c0_47 = arith.constant 0 : index
    %c0_48 = arith.constant 0 : index
    %35 = vector.load %arg4[%c3, %c0_47, %c0_48] : memref<4x16x8xf32, #tpu.memory_space<vmem>>, vector<1x16x8xf32>
    %36 = vector.shape_cast %35 : vector<1x16x8xf32> to vector<16x8xf32>
    %cst_49 = arith.constant dense<0.000000e+00> : vector<64x8xf32>
    %37 = tpu.matmul %34, %36, %cst_49 {dimension_numbers = #tpu.dot_dimension_numbers<[1], [0], [0], [1], [0, 0, 1, 1], [], []>} : vector<64x16xf32>, vector<16x8xf32>, vector<64x8xf32> -> vector<64x8xf32>
    %38 = arith.addf %32, %37 : vector<64x8xf32>
    %39 = vector.shape_cast %38 : vector<64x8xf32> to vector<1x8x8x8xf32>
    %c0_50 = arith.constant 0 : index
    %c0_51 = arith.constant 0 : index
    %c0_52 = arith.constant 0 : index
    %c0_53 = arith.constant 0 : index
    %40 = vector.load %arg6[%c0_50, %c0_51, %c0_52, %c0_53] : memref<1x8x8x8xf32, #tpu.memory_space<vmem>>, vector<1x8x8x8xf32>
    tpu.vector_store %arg6[%c0_50, %c0_51, %c0_52, %c0_53], %39 {strides = array<i32>} : memref<1x8x8x8xf32, #tpu.memory_space<vmem>>, vector<1x8x8x8xf32>,
    %c0_54 = arith.constant 0 : index
    %c0_55 = arith.constant 0 : index
    %41 = vector.load %arg5[%c0_54, %c0_55] : memref<16x8xf32, #tpu.memory_space<vmem>>, vector<16x8xf32>
    %cst_56 = arith.constant dense<0.000000e+00> : vector<64x8xf32>
    %42 = tpu.matmul %34, %41, %cst_56 {dimension_numbers = #tpu.dot_dimension_numbers<[1], [0], [0], [1], [0, 0, 1, 1], [], []>} : vector<64x16xf32>, vector<16x8xf32>, vector<64x8xf32> -> vector<64x8xf32>
    %43 = vector.shape_cast %42 : vector<64x8xf32> to vector<1x8x8x8xf32>
    %c0_57 = arith.constant 0 : index
    %c0_58 = arith.constant 0 : index
    %c0_59 = arith.constant 0 : index
    %c0_60 = arith.constant 0 : index
    %44 = vector.load %arg7[%c0_57, %c0_58, %c0_59, %c0_60] : memref<1x8x8x8xf32, #tpu.memory_space<vmem>>, vector<1x8x8x8xf32>
    tpu.vector_store %arg7[%c0_57, %c0_58, %c0_59, %c0_60], %43 {strides = array<i32>} : memref<1x8x8x8xf32, #tpu.memory_space<vmem>>, vector<1x8x8x8xf32>,
    %cst_61 = arith.constant dense<0.000000e+00> : vector<8xf32>
    %45 = vector.multi_reduction <add>, %38, %cst_61 [0] : vector<64x8xf32> to vector<8xf32>
    %46 = vector.shape_cast %45 : vector<8xf32> to vector<1x8xf32>
    %c0_62 = arith.constant 0 : index
    %c0_63 = arith.constant 0 : index
    %c0_64 = arith.constant 0 : index
    %47 = vector.load %arg8[%c0_62, %c0_63, %c0_64] : memref<1x2x8xf32, #tpu.memory_space<vmem>>, vector<1x1x8xf32>
    %48 = vector.shape_cast %47 : vector<1x1x8xf32> to vector<1x8xf32>
    %49 = vector.shape_cast %46 : vector<1x8xf32> to vector<1x1x8xf32>
    tpu.vector_store %arg8[%c0_62, %c0_63, %c0_64], %49 {strides = array<i32>} : memref<1x2x8xf32, #tpu.memory_space<vmem>>, vector<1x1x8xf32>,
    %50 = arith.mulf %38, %38 : vector<64x8xf32>
    %cst_65 = arith.constant dense<0.000000e+00> : vector<8xf32>
    %51 = vector.multi_reduction <add>, %50, %cst_65 [0] : vector<64x8xf32> to vector<8xf32>
    %52 = vector.shape_cast %51 : vector<8xf32> to vector<1x8xf32>
    %c0_66 = arith.constant 0 : index
    %c1_67 = arith.constant 1 : index
    %c0_68 = arith.constant 0 : index
    %53 = vector.load %arg8[%c0_66, %c1_67, %c0_68] : memref<1x2x8xf32, #tpu.memory_space<vmem>>, vector<1x1x8xf32>
    %54 = vector.shape_cast %53 : vector<1x1x8xf32> to vector<1x8xf32>
    %55 = vector.shape_cast %52 : vector<1x8xf32> to vector<1x1x8xf32>
    tpu.vector_store %arg8[%c0_66, %c1_67, %c0_68], %55 {strides = array<i32>} : memref<1x2x8xf32, #tpu.memory_space<vmem>>, vector<1x1x8xf32>,
    return
  }
  func.func @transform_0(%arg0: i32) -> (i32, i32, i32, i32) {
    %c0_i32 = arith.constant 0 : i32
    %c0_i32_0 = arith.constant 0 : i32
    %c0_i32_1 = arith.constant 0 : i32
    %c0_i32_2 = arith.constant 0 : i32
    return %arg0, %c0_i32, %c0_i32_0, %c0_i32_1 : i32, i32, i32, i32
  }
  func.func @transform_1(%arg0: i32) -> (i32, i32) {
    %c0_i32 = arith.constant 0 : i32
    %c0_i32_0 = arith.constant 0 : i32
    %c0_i32_1 = arith.constant 0 : i32
    return %c0_i32, %c0_i32_0 : i32, i32
  }
  func.func @transform_2(%arg0: i32) -> (i32, i32) {
    %c0_i32 = arith.constant 0 : i32
    %c0_i32_0 = arith.constant 0 : i32
    %c0_i32_1 = arith.constant 0 : i32
    return %c0_i32, %c0_i32_0 : i32, i32
  }
  func.func @transform_3(%arg0: i32) -> (i32, i32, i32) {
    %c0_i32 = arith.constant 0 : i32
    %c0_i32_0 = arith.constant 0 : i32
    %c0_i32_1 = arith.constant 0 : i32
    %c0_i32_2 = arith.constant 0 : i32
    return %c0_i32, %c0_i32_0, %c0_i32_1 : i32, i32, i32
  }
  func.func @transform_4(%arg0: i32) -> (i32, i32) {
    %c0_i32 = arith.constant 0 : i32
    %c0_i32_0 = arith.constant 0 : i32
    %c0_i32_1 = arith.constant 0 : i32
    return %c0_i32, %c0_i32_0 : i32, i32
  }
  func.func @transform_5(%arg0: i32) -> (i32, i32, i32, i32) {
    %c0_i32 = arith.constant 0 : i32
    %c0_i32_0 = arith.constant 0 : i32
    %c0_i32_1 = arith.constant 0 : i32
    %c0_i32_2 = arith.constant 0 : i32
    return %arg0, %c0_i32, %c0_i32_0, %c0_i32_1 : i32, i32, i32, i32
  }
  func.func @transform_6(%arg0: i32) -> (i32, i32, i32, i32) {
    %c0_i32 = arith.constant 0 : i32
    %c0_i32_0 = arith.constant 0 : i32
    %c0_i32_1 = arith.constant 0 : i32
    %c0_i32_2 = arith.constant 0 : i32
    return %arg0, %c0_i32, %c0_i32_0, %c0_i32_1 : i32, i32, i32, i32
  }
  func.func @transform_7(%arg0: i32) -> (i32, i32, i32) {
    %c0_i32 = arith.constant 0 : i32
    %c0_i32_0 = arith.constant 0 : i32
    %c0_i32_1 = arith.constant 0 : i32
    return %arg0, %c0_i32, %c0_i32_0 : i32, i32, i32
  }
}

</mosaic_0001>

<bundles_post_ra>
// kernel: tpu_custom_call.1
= control target key start
LH: loop header
LB: loop body
LE: loop exit
PB: predicated region body
PF: predicated region fallthrough
CT: control target
= control target key end

     0   :  { %s2245_s0 = inlined_call_operand.hbm [shape: f32[2,8,8,16], index: 0, kind: input, shape index: {}]   ;;  %s2246_s1 = inlined_call_operand.vmem [shape: f32[1,16], index: 1, kind: input, shape index: {}]   ;;  %s2247_s2 = inlined_call_operand.vmem [shape: f32[1,16], index: 2, kind: input, shape index: {}]   ;;  %s2248_s3 = inlined_call_operand.vmem [shape: f32[4,16,8], index: 3, kind: input, shape index: {}]   ;;  %s2249_s4 = inlined_call_operand.vmem [shape: f32[16,8], index: 4, kind: input, shape index: {}]   ;;  %s2250_s5 = inlined_call_operand.hbm [shape: f32[2,8,8,8], index: 5, kind: output, shape index: {0}]   ;;  %s2251_s6 = inlined_call_operand.hbm [shape: f32[2,8,8,8], index: 6, kind: output, shape index: {1}]   ;;  %s2252_s7 = inlined_call_operand.hbm [shape: f32[2,2,8], index: 7, kind: output, shape index: {2}]  }
   0x1   :  { %2255 = sst [smem:[#allocation13_spill]] %s2245_s0 }
   0x2   :  { %13 = vsyncpa [#allocation4], 0 }
   0x3   :  { %15 = vsyncpa [#allocation4 + $0x1], 0 }
   0x4   :  { %16 = vsyncpa [#allocation5], 0 }
   0x5   :  { %18 = vsyncpa [#allocation5 + $0x1], 0 }
   0x6   :  { %19 = vsyncpa [#allocation8], 0 }
   0x7   :  { %21 = vsyncpa [#allocation8 + $0x1], 0  ;;  %s1838_s24 = smov 0   ;;  %s1840_s25 = smov 0  }
   0x8   :  { %s1842_s26 = smov 0   ;;  %s1844_s27 = smov 0  }
   0x9 LB: > { %s1859_s28 = sadd.s32 4294967295, %s1787_s27   ;;  %s2254_s29 = sadd.s32 4294967294, %s1787_s27   ;;  %s1787_s27 = sphi %s1844_s27, %s2269_s27   ;;  %s1783_s26 = sphi %s1842_s26, %s2268_s26   ;;  %s1779_s25 = sphi %s1840_s25, %s2267_s25   ;;  %s1775_s24 = sphi %s1838_s24, %s2266_s24  }
   0xa   : > { %s1863_s30 = sadd.s32 1, %s1787_s27   ;;  %s34_s8 = sadd.s32 1, %s1783_s26 }
   0xb   : > { %s31_s9 = ssub.s32 %s1787_s27, %s1863_s30  ;;  %p41_p0 = scmp.ne.s32.totalorder %s1783_s26, %s1779_s25 }
   0xc   : > { %p32_p1 = scmp.eq.s32.totalorder %s31_s9, 0  ;;  %p42_p2 = scmp.eq.s32.totalorder %s1787_s27, 0 }
   0xd   : > { %p47_p3 = scmp.ne.s32.totalorder %s1779_s25, %s1775_s24  ;;  %p48_p4 = scmp.eq.s32.totalorder %s1859_s28, 0 }
   0xe   : > { %s1875_s10 = scalar_select %p32_p1, %s1783_s26, %s34_s8  }
   0xf   : > { %p1877_p5 = por %p42_p2, %p41_p0  ;;  %p1881_p6 = por %p48_p4, %p47_p3 }
  0x10   : > { %p155_p7 = scmp.eq.s32.totalorder %s1859_s28, 1  ;;  %p161_p8 = scmp.eq.s32.totalorder %s2254_s29, 1 }
  0x11   : > { %p1592_p10 = scmp.lt.s32.totalorder %s1787_s27, 2  ;;  %s245_s15 = sand.u32 1, %s1783_s26  }
  0x12   : > { %p1890_p11 = por %p155_p7, %p41_p0  ;;  %p1894_p12 = por %p161_p8, %p47_p3 }
  0x13   : > { %s1391_s16 = sshll.u32 %s1787_s27, 10  ;;  %s1325_s17 = sshll.u32 %s245_s15, 6 }
  0x14   : > { %s2258_s13 = scalar_select %p1890_p11, 1, 0 }
  0x15   : > { %s2259_s14 = scalar_select %p1894_p12, 1, 0 }
  0x16   : > { %s2260_s0 = sld [smem:[#allocation13_spill]]  ;;  %s249_s21 = scalar_lea.vmem [#allocation3], %s1325_s17 }
  0x17   : > { %s256_s22 = sshll.u32 %s249_s21, 4  ;;  %p1907_p13 = pnand %p1592_p10, %p1877_p5  ;;  %s1911_s22 = int_to_ptr.vmem [resolvable:$true] %s256_s22 }
  0x18   : > { %s1913_s8 = scalar_lea.sflag [#allocation4], %s245_s15 }
  0x19   : > { %p1633_p1 = pneg %p1907_p13 }
  0x1c   : > { %s1903_s20 = scalar_lea.hbm %s2260_s0, %s1391_s16  ;;  %s1636_s17 = scalar_lea.hbm %s2260_s0, 2048 }
  0x1d   : > { %s1631_s9 = scalar_lea.hbm %s1903_s20, 1024  ;;  %p1637_p4 = scmp.lt.u32.totalorder %s1903_s20, %s2260_s0 }
  0x1e   : > { %p1632_p0 = scmp.ne.s32.totalorder %s1903_s20, %s1631_s9  ;;  %p1638_p5 = scmp.lt.u32.totalorder %s1636_s17, %s1631_s9 }
  0x1f   : > { %p1640_p8 = scmp.lt.u32.totalorder %s1631_s9, %s1903_s20 }
  0x20   : > { %p1634_p2 = pnand %p1633_p1, %p1632_p0  ;;  %p1639_p7 = por %p1638_p5, %p1637_p4 }
  0x22   : > { %p1635_p3 = pneg %p1634_p2  ;;  %p1641_p10 = por %p1640_p8, %p1639_p7 }
  0x24   : > { %p1642_p9 = pnand %p1641_p10, %p1635_p3 }
  0x26   : > { %1645 = shalt.err (!%p1642_p9)
}
  0x27   : > { %s1646_s15 = scalar_lea.vmem %s1911_s22, 1024  ;;  %s1789_s21 = smov [#allocation3]  }
  0x28   : > { %p1647_p0 = scmp.ne.s32.totalorder %s1911_s22, %s1646_s15  ;;  %s1651_s16 = sshll.u32 %s1789_s21, 4  ;;  %s1652_s16 = int_to_ptr.vmem [resolvable:$false] %s1651_s16 }
  0x29   : > { %s1653_s11 = scalar_lea.vmem %s1652_s16, 2048  ;;  %p1654_p11 = scmp.lt.s32.totalorder %s1911_s22, %s1652_s16 }
  0x2a   : > { %p1649_p2 = pnand %p1647_p0, %p1633_p1  ;;  %p1655_p4 = scmp.lt.s32.totalorder %s1653_s11, %s1646_s15 }
  0x2c   : > { %p1650_p12 = pneg %p1649_p2  ;;  %p1656_p5 = por %p1655_p4, %p1654_p11 }
  0x2e   : > { %p1657_p7 = pnand %p1656_p5, %p1650_p12 }
  0x30   : > { %1660 = shalt.err (!%p1657_p7)
}
  0x31   : > { %s1790_s9 = smov 128   ;;  %s1791_s17 = smov 8  }
  0x32   : > { %1581 = dma.hbm_to_vmem [thread:$0]  (!%p1907_p13), %s1903_s20, 1024, %s1911_s22, %s1913_s8, %s1790_s9, %s1790_s9, %s1791_s17  }
  0x33   : > { %p1328_p9 = scmp.ge.s32.totalorder %s1787_s27, 1  ;;  %p264_p1 = scmp.lt.s32.totalorder %s1787_s27, 3 }
  0x35   : > { %p265_p3 = pnand %p1328_p9, %p264_p1 }
  0x36   : > { %s1944_s18 = sand.u32 (!%p265_p3), 1, %s1779_s25  }
  0x37   : > { %268 = sbr.rel (%p265_p3) target bundleno = 406 (0x196), region = 40  ;;  %s1947_s19 = sshll.u32 (!%p265_p3), %s1944_s18, 6 }
  0x38   : > { %s271_s15 = scalar_lea.sflag (!%p265_p3), [#allocation4], %s1944_s18  ;;  %s1951_s21 = scalar_lea.vmem (!%p265_p3), [#allocation3], %s1947_s19 }
  0x3e   : > { %1762 = dma.done.wait (%p1881_p6), %s271_s15, 1024  }
  0x3f   : > { %1764 = vsyncadd (%p1881_p6), %s271_s15, 4294966272  ;;  %vm361_vm0 = vcmask 130048   ;;  %vm363_vm1 = vcmask 122880   ;;  %v1792_v0 = vmov 0.0   ;;  %v391_v1 = vld [vmem:[%s2248_s3] sm:$0xff]  ;;  %v392_v2 = vld [vmem:[%s2248_s3 + $0x8] sm:$0xff] }
  0x40   : > { %362 = vst.msk [vmem:[#allocation2] sm:$0xff] %vm361_vm0, %v1792_v0  ;;  %v1353_v3 = vld [vmem:[%s2248_s3 + $0x20] sm:$0xff]  ;;  %v1967_v4 = vpack.c.bf16 %v392_v2, %v391_v1  ;;  %v1354_v5 = vld [vmem:[%s2248_s3 + $0x28] sm:$0xff]  ;;  %v315_v6 = vld [vmem:[%s1951_s21] sm:$0xff]  ;;  %vm958_vm2 = vcmask 64512   ;;  %s2065_s23 = scalar_lea.vmem [#allocation7], %s1947_s19 }
  0x41   : > { %364 = vst.msk [vmem:[#allocation2 + $0x8] sm:$0x1] %vm363_vm1, %v1792_v0  ;;  %366 = vst.msk [vmem:[#allocation2 + $0x10] sm:$0x1] %vm363_vm1, %v1792_v0  ;;  %v1333_v7 = vld [vmem:[%s2246_s1] ss:$0 sm:$0xff]  ;;  %v1976_v9 = vpack.c.bf16 %v1354_v5, %v1353_v3 }
  0x42   : > { %367 = vst.msk [vmem:[#allocation2 + $0x20] sm:$0x1] %vm363_vm1, %v1792_v0  ;;  %368 = vst.msk [vmem:[#allocation2 + $0x30] sm:$0x1] %vm363_vm1, %v1792_v0  ;;  %v330_v10 = vmul.f32 %v1333_v7, %v315_v6  ;;  %v1334_v11 = vld [vmem:[%s2247_s2] ss:$0 sm:$0xff]  ;;  %1529 = vmatprep.subr.bf16.mxu0 %v1967_v4 }
  0x43   : > { %369 = vst.msk [vmem:[#allocation2 + $0x40] sm:$0x1] %vm363_vm1, %v1792_v0  ;;  %370 = vst.msk [vmem:[#allocation2 + $0x50] sm:$0x1] %vm363_vm1, %v1792_v0  ;;  %v1335_v12 = vld [vmem:[%s2248_s3 + $0x10] sm:$0xff]  ;;  %v1336_v13 = vld [vmem:[%s2248_s3 + $0x18] sm:$0xff]  ;;  %1531 = vmatpush3.bf16.msra.mxu0 %v1967_v4 }
  0x44   : > { %371 = vst.msk [vmem:[#allocation2 + $0x60] sm:$0x1] %vm363_vm1, %v1792_v0  ;;  %372 = vst.msk [vmem:[#allocation2 + $0x70] sm:$0x1] %vm363_vm1, %v1792_v0  ;;  %v316_v14 = vld [vmem:[%s1951_s21 + $0x8] sm:$0xff]  ;;  %v317_v15 = vld [vmem:[%s1951_s21 + $0x10] sm:$0xff]  ;;  %v345_v16 = vadd.f32 %v1334_v11, %v330_v10  ;;  %v1524_v17 = vpack.c.bf16 %v1336_v13, %v1335_v12  ;;  %1533 = vmatprep.subr.bf16.mxu0 %v1976_v9 }
  0x45   : > { %373 = vst.msk [vmem:[#allocation2 + $0x80] sm:$0x1] %vm363_vm1, %v1792_v0  ;;  %365 = vst.msk [vmem:[#allocation2] sm:$0x1] %vm363_vm1, %v1792_v0  ;;  %v331_v18 = vmul.f32 %v1333_v7, %v316_v14  ;;  %v332_v19 = vmul.f32 %v1333_v7, %v317_v15  ;;  %v318_v21 = vld [vmem:[%s1951_s21 + $0x18] sm:$0xff]  ;;  %v319_v22 = vld [vmem:[%s1951_s21 + $0x20] sm:$0xff] }
  0x46   : > { %v320_v23 = vld [vmem:[%s1951_s21 + $0x28] sm:$0xff]  ;;  %v353_v24 = vmax.f32 %v345_v16, 0.0  ;;  %1525 = vmatprep.subr.bf16.mxu1 %v1524_v17  ;;  %v333_v27 = vmul.f32 %v1333_v7, %v318_v21  ;;  %v321_v28 = vld [vmem:[%s1951_s21 + $0x30] sm:$0xff]  ;;  %v322_v29 = vld [vmem:[%s1951_s21 + $0x38] sm:$0xff]  ;;  %v334_v30 = vmul.f32 %v1333_v7, %v319_v22  ;;  %s2072_s8 = scalar_lea.vmem [#allocation6], %s1947_s19  ;;  %s1175_s19 = sshll.u32 %s2065_s23, 4  ;;  %s2098_s19 = int_to_ptr.vmem [resolvable:$true] %s1175_s19 }
  0x47   : > { %v346_v25 = vadd.f32 %v1334_v11, %v331_v18  ;;  %v347_v26 = vadd.f32 %v1334_v11, %v332_v19  ;;  %1527 = vmatpush3.bf16.msra.mxu1 %v1524_v17  ;;  %v335_v31 = vmul.f32 %v1333_v7, %v320_v23  ;;  %v336_v32 = vmul.f32 %v1333_v7, %v321_v28  ;;  %v1363_v42 = vld [vmem:[%s2248_s3 + $0x30] sm:$0xff]  ;;  %v1364_v43 = vld [vmem:[%s2248_s3 + $0x38] sm:$0xff]  ;;  %v967_v48 = vld [vmem:[%s2249_s4] sm:$0xff]  ;;  %s1140_s16 = sand.u32 1, %s1859_s28   ;;  %s1392_s21 = sshll.u32 %s1859_s28, 10 }
  0x48   : > { %v393_v20 = vld [vmem:[#allocation2 + $0x1] sm:$0xff]  ;;  %v337_v33 = vmul.f32 %v1333_v7, %v322_v29  ;;  %375 = vst.msk [vmem:[#allocation2 + $0x11] sm:$0xff] %vm361_vm0, %v353_v24  ;;  %v348_v36 = vadd.f32 %v1334_v11, %v333_v27  ;;  %1544 = vmatprep.subr.bf16.mxu1 %v1967_v4  ;;  %v349_v37 = vadd.f32 %v1334_v11, %v334_v30  ;;  %s1159_s11 = sshll.u32 %s2072_s8, 4  ;;  %s2112_s15 = scalar_lea.hbm %s2251_s6, %s1392_s21  ;;  %s2129_s11 = int_to_ptr.vmem [resolvable:$true] %s1159_s11 }
  0x49   : > { %1448 = vmatprep.mubr.msk.f32.mxu1 %vm361_vm0, %v393_v20  ;;  %v354_v34 = vmax.f32 %v346_v25, 0.0  ;;  %v355_v35 = vmax.f32 %v347_v26, 0.0  ;;  %v350_v38 = vadd.f32 %v1334_v11, %v335_v31  ;;  %v351_v39 = vadd.f32 %v1334_v11, %v336_v32  ;;  %v968_v49 = vld [vmem:[%s2249_s4 + $0x8] sm:$0xff]  ;;  %s2127_s12 = scalar_lea.hbm %s2250_s5, %s1392_s21  ;;  %s2136_s9 = scalar_lea.sflag [#allocation8], %s1140_s16 }
  0x4a   : > { %v352_v40 = vadd.f32 %v1334_v11, %v337_v33  ;;  %v356_v41 = vmax.f32 %v348_v36, 0.0  ;;  %v357_v44 = vmax.f32 %v349_v37, 0.0  ;;  %v1536_v50 = vpack.c.bf16 %v1364_v43, %v1363_v42  ;;  %s1661_s17 = scalar_lea.vmem %s2098_s19, 1024  ;;  %p2262_p11 = scmp.ne.s32.totalorder %s2258_s13, 0 }
  0x4b   : > { %376 = vst.msk [vmem:[#allocation2 + $0x21] sm:$0xff] %vm361_vm0, %v354_v34  ;;  %377 = vst.msk [vmem:[#allocation2 + $0x31] sm:$0xff] %vm361_vm0, %v355_v35  ;;  %v358_v45 = vmax.f32 %v350_v38, 0.0  ;;  %v359_v46 = vmax.f32 %v351_v39, 0.0  ;;  %v1540_v53 = vpack.c.bf16 %v968_v49, %v967_v48  ;;  %p1662_p6 = scmp.ne.s32.totalorder %s2098_s19, %s1661_s17 }
  0x4c   : > { %v383_v8 = vld [vmem:[#allocation2] sm:$0xff]  ;;  %v360_v47 = vmax.f32 %v352_v40, 0.0  ;;  %378 = vst.msk [vmem:[#allocation2 + $0x41] sm:$0xff] %vm361_vm0, %v356_v41  ;;  %379 = vst.msk [vmem:[#allocation2 + $0x51] sm:$0xff] %vm361_vm0, %v357_v44 }
  0x4d   : > { %1464 = vmatprep.mubr.msk.f32.mxu0 %vm361_vm0, %v383_v8  ;;  %380 = vst.msk [vmem:[#allocation2 + $0x61] sm:$0xff] %vm361_vm0, %v358_v45  ;;  %381 = vst.msk [vmem:[#allocation2 + $0x71] sm:$0xff] %vm361_vm0, %v359_v46  ;;  %p1663_p12 = pnand %p1662_p6, %p2262_p11 }
  0x4e   : > { %382 = vst.msk [vmem:[#allocation2 + $0x81] sm:$0xff] %vm361_vm0, %v360_v47 }
  0x4f   : > { %v384_v51 = vld [vmem:[#allocation2 + $0x10] sm:$0xff]  ;;  %p1664_p13 = pneg %p1663_p12 }
  0x50   : > { %v394_v52 = vld [vmem:[#allocation2 + $0x11] sm:$0xff]  ;;  %1465 = vmatmul.mubr.msk.f32.vlgmr.msra.gmra.mrb[0].mxu0 %vm361_vm0, %v384_v51 }
  0x51   : > { %1449 = vmatmul.mubr.msk.f32.vlgmr.msra.gmra.mrb[0].mxu1 %vm361_vm0, %v394_v52  ;;  %1535 = vmatpush3.bf16.msra.mxu0 %v1976_v9 }
  0x52   : > { %v385_v54 = vld [vmem:[#allocation2 + $0x20] sm:$0xff]  ;;  %v386_v55 = vld [vmem:[#allocation2 + $0x30] sm:$0xff]  ;;  %1545 = vmatpush3.bf16.msra.mxu1 %v1967_v4  ;;  %1537 = vmatprep.subr.bf16.mxu0 %v1536_v50 }
  0x53   : > { %v395_v56 = vld [vmem:[#allocation2 + $0x21] sm:$0xff]  ;;  %1467 = vmatprep.mubr.msk.f32.mxu0 %vm361_vm0, %v385_v54  ;;  %v396_v57 = vld [vmem:[#allocation2 + $0x31] sm:$0xff]  ;;  %1541 = vmatprep.subr.bf16.mxu1 %v1540_v53 }
  0x54   : > { %1451 = vmatprep.mubr.msk.f32.mxu1 %vm361_vm0, %v395_v56  ;;  %v397_v58 = vld [vmem:[#allocation2 + $0x41] sm:$0xff]  ;;  %1468 = vmatmul.mubr.msk.f32.gmra.mrb[2].mxu0 %vm361_vm0, %v386_v55  ;;  %v398_v59 = vld [vmem:[#allocation2 + $0x51] sm:$0xff] }
  0x55   : > { %1452 = vmatmul.mubr.msk.f32.gmra.mrb[2].mxu1 %vm361_vm0, %v396_v57  ;;  %1480 = vmatprep.mubr.msk.f32.mxu0 %vm361_vm0, %v384_v51  ;;  %v399_v60 = vld [vmem:[#allocation2 + $0x61] sm:$0xff]  ;;  %v400_v62 = vld [vmem:[#allocation2 + $0x71] sm:$0xff] }
  0x56   : > { %1454 = vmatprep.mubr.msk.f32.mxu1 %vm361_vm0, %v397_v58  ;;  %v665_v61 = vld [vmem:[#allocation2 + $0x40] sm:$0xff]  ;;  %v666_v63 = vld [vmem:[#allocation2 + $0x50] sm:$0xff] }
  0x57   : > { %v667_v0 = vld [vmem:[#allocation2 + $0x60] sm:$0xff]  ;;  %v668_v1 = vld [vmem:[#allocation2 + $0x70] sm:$0xff] }
  0x58   : > { %1481 = vmatmul.mubr.msk.f32.vlgmr.msra.gmra.mrb[0].mxu0 %vm361_vm0, %v385_v54  ;;  %v669_v2 = vld [vmem:[#allocation2 + $0x80] sm:$0xff] }
  0x59   : > { %1455 = vmatmul.mubr.msk.f32.gmra.mrb[4].mxu1 %vm361_vm0, %v398_v59  ;;  %1539 = vmatpush3.bf16.msra.mxu0 %v1536_v50  ;;  %v817_v3 = vld [vmem:[#allocation2 + $0x81] sm:$0xff] }
  0x5a   : > { %1483 = vmatprep.mubr.msk.f32.mxu0 %vm361_vm0, %v386_v55  ;;  %1457 = vmatprep.mubr.msk.f32.mxu1 %vm361_vm0, %v399_v60 }
  0x5c   : > { %1484 = vmatmul.mubr.msk.f32.gmra.mrb[2].mxu0 %vm361_vm0, %v665_v61 }
  0x5d   : > { %1458 = vmatmul.mubr.msk.f32.gmra.mrb[6].mxu1 %vm361_vm0, %v400_v62  ;;  %1486 = vmatprep.mubr.msk.f32.mxu0 %vm361_vm0, %v666_v63 }
  0x5e   : > { %1470 = vmatprep.mubr.msk.f32.mxu1 %vm361_vm0, %v665_v61 }
  0x60   : > { %1487 = vmatmul.mubr.msk.f32.gmra.mrb[4].mxu0 %vm361_vm0, %v667_v0 }
  0x61   : > { %1471 = vmatmul.mubr.msk.f32.vlgmr.msra.gmra.mrb[4].mxu1 %vm361_vm0, %v666_v63  ;;  %1489 = vmatprep.mubr.msk.f32.mxu0 %vm361_vm0, %v668_v1 }
  0x62   : > { %1473 = vmatprep.mubr.msk.f32.mxu1 %vm361_vm0, %v667_v0  ;;  %1543 = vmatpush3.bf16.msra.mxu1 %v1540_v53 }
  0x64   : > { %1490 = vmatmul.mubr.msk.f32.gmra.mrb[6].mxu0 %vm361_vm0, %v669_v2 }
  0x65   : > { %1474 = vmatmul.mubr.msk.f32.gmra.mrb[6].mxu1 %vm361_vm0, %v668_v1  ;;  %1496 = vmatprep.mubr.msk.f32.mxu0 %vm361_vm0, %v394_v52 }
  0x66   : > { %1512 = vmatprep.mubr.msk.f32.mxu1 %vm361_vm0, %v394_v52 }
  0x68   : > { %1497 = vmatmul.mubr.msk.f32.vlgmr.msra.gmra.mrb[0].mxu0 %vm361_vm0, %v395_v56 }
  0x69   : > { %1513 = vmatmul.mubr.msk.f32.vlgmr.msra.gmra.mrb[8].mxu1 %vm361_vm0, %v395_v56  ;;  %1499 = vmatprep.mubr.msk.f32.mxu0 %vm361_vm0, %v396_v57 }
  0x6a   : > { %1515 = vmatprep.mubr.msk.f32.mxu1 %vm361_vm0, %v396_v57 }
  0x6c   : > { %1500 = vmatmul.mubr.msk.f32.gmra.mrb[2].mxu0 %vm361_vm0, %v397_v58 }
  0x6d   : > { %1516 = vmatmul.mubr.msk.f32.gmra.mrb[10].mxu1 %vm361_vm0, %v397_v58  ;;  %1502 = vmatprep.mubr.msk.f32.mxu0 %vm361_vm0, %v398_v59 }
  0x6e   : > { %1518 = vmatprep.mubr.msk.f32.mxu1 %vm361_vm0, %v398_v59 }
  0x70   : > { %1503 = vmatmul.mubr.msk.f32.gmra.mrb[4].mxu0 %vm361_vm0, %v399_v60 }
  0x71   : > { %1519 = vmatmul.mubr.msk.f32.gmra.mrb[12].mxu1 %vm361_vm0, %v399_v60  ;;  %1505 = vmatprep.mubr.msk.f32.mxu0 %vm361_vm0, %v400_v62 }
  0x72   : > { %1521 = vmatprep.mubr.msk.f32.mxu1 %vm361_vm0, %v400_v62 }
  0x74   : > { %1506 = vmatmul.mubr.msk.f32.gmra.mrb[6].mxu0 %vm361_vm0, %v817_v3 }
  0x75   : > { %1522 = vmatmul.mubr.msk.f32.gmra.mrb[14].mxu1 %vm361_vm0, %v817_v3 }
 0x124   : > { %v1450_v4 = vpop.f32.mrb[0].mxu1 }
 0x125   : > { %v494_v5 = vpop.f32.mrb[1].mxu1 }
 0x128   : > { %v1453_v6 = vpop.f32.mrb[2].mxu1 }
 0x129   : > { %v504_v7 = vpop.f32.mrb[3].mxu1 }
 0x134   : > { %v1472_v8 = vpop.f32.mrb[4].mxu1 }
 0x135   : > { %v643_v9 = vpop.f32.mrb[5].mxu1 }
 0x138   : > { %v2060_v10 = vpop.f32.mrb[6].mxu1 }
 0x139   : > { %v2062_v11 = vpop.f32.mrb[7].mxu1 }
 0x13b   : > { %v1498_v12 = vpop.f32.mrb[0].mxu0 }
 0x13c   : > { %v1514_v13 = vpop.f32.mrb[8].mxu1  ;;  %v1546_v14 = vadd.f32 %v1498_v12, %v1450_v4  ;;  %v911_v15 = vpop.f32.mrb[1].mxu0 }
 0x13d   : > { %1075 = vst.msk [vmem:[%s2065_s23 + $0x8] sm:$0xff] %vm958_vm2, %v1514_v13  ;;  %v1035_v16 = vpop.f32.mrb[9].mxu1  ;;  %v1547_v17 = vadd.f32 %v911_v15, %v494_v5 }
 0x13e   : > { %1074 = vst.msk [vmem:[%s2065_s23] sm:$0xff] %vm958_vm2, %v1035_v16  ;;  %960 = vst.msk [vmem:[%s2072_s8 + $0x8] sm:$0xff] %vm958_vm2, %v1546_v14  ;;  %v1083_v18 = vsel %vm958_vm2, %v1546_v14, 0.0  ;;  %v1106_v19 = vmul.f32 %v1546_v14, %v1546_v14 }
 0x13f   : > { %959 = vst.msk [vmem:[%s2072_s8] sm:$0xff] %vm958_vm2, %v1547_v17  ;;  %v1082_v20 = vsel %vm958_vm2, %v1547_v17, 0.0  ;;  %v1105_v21 = vmul.f32 %v1547_v17, %v1547_v17  ;;  %v1501_v22 = vpop.f32.mrb[2].mxu0 }
 0x140   : > { %v1517_v23 = vpop.f32.mrb[10].mxu1  ;;  %v1114_v24 = vsel %vm958_vm2, %v1106_v19, 0.0  ;;  %v1084_v25 = vadd.f32 %v1083_v18, %v1082_v20  ;;  %v1548_v26 = vadd.f32 %v1501_v22, %v1453_v6  ;;  %v921_v27 = vpop.f32.mrb[3].mxu0 }
 0x141   : > { %1077 = vst.msk [vmem:[%s2065_s23 + $0x18] sm:$0xff] %vm958_vm2, %v1517_v23  ;;  %v1045_v28 = vpop.f32.mrb[11].mxu1  ;;  %v1113_v29 = vsel %vm958_vm2, %v1105_v21, 0.0  ;;  %v1549_v30 = vadd.f32 %v921_v27, %v504_v7 }
 0x142   : > { %1076 = vst.msk [vmem:[%s2065_s23 + $0x10] sm:$0xff] %vm958_vm2, %v1045_v28  ;;  %v1115_v31 = vadd.f32 %v1114_v24, %v1113_v29  ;;  %962 = vst.msk [vmem:[%s2072_s8 + $0x18] sm:$0xff] %vm958_vm2, %v1548_v26  ;;  %v1108_v32 = vmul.f32 %v1548_v26, %v1548_v26  ;;  %v1087_v41 = vsel %vm958_vm2, %v1548_v26, 0.0 }
 0x143   : > { %961 = vst.msk [vmem:[%s2072_s8 + $0x10] sm:$0xff] %vm958_vm2, %v1549_v30  ;;  %v1085_v33 = vsel %vm958_vm2, %v1549_v30, 0.0  ;;  %v1107_v34 = vmul.f32 %v1549_v30, %v1549_v30  ;;  %v1504_v35 = vpop.f32.mrb[4].mxu0 }
 0x144   : > { %v1520_v36 = vpop.f32.mrb[12].mxu1  ;;  %v1086_v37 = vadd.f32 %v1085_v33, %v1084_v25  ;;  %v1550_v38 = vadd.f32 %v1504_v35, %v1472_v8  ;;  %v931_v39 = vpop.f32.mrb[5].mxu0  ;;  %v1118_v46 = vsel %vm958_vm2, %v1108_v32, 0.0 }
 0x145   : > { %1079 = vst.msk [vmem:[%s2065_s23 + $0x28] sm:$0xff] %vm958_vm2, %v1520_v36  ;;  %v1055_v40 = vpop.f32.mrb[13].mxu1  ;;  %v1116_v42 = vsel %vm958_vm2, %v1107_v34, 0.0  ;;  %v1551_v43 = vadd.f32 %v931_v39, %v643_v9 }
 0x146   : > { %1078 = vst.msk [vmem:[%s2065_s23 + $0x20] sm:$0xff] %vm958_vm2, %v1055_v40  ;;  %v1117_v44 = vadd.f32 %v1116_v42, %v1115_v31  ;;  %964 = vst.msk [vmem:[%s2072_s8 + $0x28] sm:$0xff] %vm958_vm2, %v1550_v38  ;;  %v1088_v45 = vadd.f32 %v1087_v41, %v1086_v37  ;;  %v1110_v47 = vmul.f32 %v1550_v38, %v1550_v38  ;;  %v1091_v57 = vsel %vm958_vm2, %v1550_v38, 0.0 }
 0x147   : > { %963 = vst.msk [vmem:[%s2072_s8 + $0x20] sm:$0xff] %vm958_vm2, %v1551_v43  ;;  %v1089_v48 = vsel %vm958_vm2, %v1551_v43, 0.0  ;;  %v1109_v49 = vmul.f32 %v1551_v43, %v1551_v43  ;;  %v1507_v50 = vpop.f32.mrb[6].mxu0 }
 0x148   : > { %v1523_v51 = vpop.f32.mrb[14].mxu1  ;;  %v1090_v52 = vadd.f32 %v1089_v48, %v1088_v45  ;;  %v1119_v53 = vadd.f32 %v1118_v46, %v1117_v44  ;;  %v2115_v54 = vadd.f32 %v1507_v50, %v2060_v10  ;;  %v941_v55 = vpop.f32.mrb[7].mxu0 }
 0x149   : > { %1081 = vst.msk [vmem:[%s2065_s23 + $0x38] sm:$0xff] %vm958_vm2, %v1523_v51  ;;  %v1065_v56 = vpop.f32.mrb[15].mxu1  ;;  %v1120_v58 = vsel %vm958_vm2, %v1109_v49, 0.0  ;;  %v1553_v59 = vadd.f32 %v941_v55, %v2062_v11 }
 0x14a   : > { %1080 = vst.msk [vmem:[%s2065_s23 + $0x30] sm:$0xff] %vm958_vm2, %v1065_v56  ;;  %v1121_v60 = vadd.f32 %v1120_v58, %v1119_v53  ;;  %966 = vst.msk [vmem:[%s2072_s8 + $0x38] sm:$0xff] %vm958_vm2, %v2115_v54  ;;  %v1092_v61 = vadd.f32 %v1091_v57, %v1090_v52  ;;  %s1793_s23 = smov [#allocation7]  }
 0x14b   : > { %s1665_s29 = sshll.u32 %s1793_s23, 4  ;;  %s1666_s29 = int_to_ptr.vmem [resolvable:$false] %s1665_s29 }
 0x14c   : > { %s1667_s21 = scalar_lea.vmem %s1666_s29, 2048  ;;  %p1668_p8 = scmp.lt.s32.totalorder %s2098_s19, %s1666_s29 }
 0x14d   : > { %p1669_p10 = scmp.lt.s32.totalorder %s1667_s21, %s1661_s17 }
 0x14f   : > { %p1670_p0 = por %p1669_p10, %p1668_p8 }
 0x151   : > { %p1671_p2 = pnand %p1670_p0, %p1664_p13 }
 0x153   : > { %1674 = shalt.err (!%p1671_p2)
}
 0x154   : > { %s1675_s16 = scalar_lea.hbm %s2112_s15, 1024  ;;  %s1679_s23 = scalar_lea.hbm %s2251_s6, 2048 }
 0x155   : > { %p1676_p4 = scmp.ne.s32.totalorder %s2112_s15, %s1675_s16  ;;  %p1680_p9 = scmp.lt.u32.totalorder %s2112_s15, %s2251_s6 }
 0x156   : > { %p1681_p1 = scmp.lt.u32.totalorder %s1679_s23, %s1675_s16  ;;  %p1683_p6 = scmp.lt.u32.totalorder %s1675_s16, %s2112_s15 }
 0x157   : > { %p1677_p5 = pnand %p1676_p4, %p2262_p11 }
 0x158   : > { %p1682_p3 = por %p1681_p1, %p1680_p9 }
 0x159   : > { %p1678_p7 = pneg %p1677_p5 }
 0x15a   : > { %p1684_p12 = por %p1683_p6, %p1682_p3 }
 0x15c   : > { %p1685_p13 = pnand %p1684_p12, %p1678_p7 }
 0x15e   : > { %1688 = shalt.err (!%p1685_p13)
}
 0x15f   : > { %s1794_s17 = smov 128   ;;  %s1795_s21 = smov 8   ;;  %v1122_v62 = vsel %vm958_vm2, %v1110_v47, 0.0  ;;  %v1112_v63 = vmul.f32 %v2115_v54, %v2115_v54  ;;  %965 = vst.msk [vmem:[%s2072_s8 + $0x30] sm:$0xff] %vm958_vm2, %v1553_v59  ;;  %v1093_v0 = vsel %vm958_vm2, %v1553_v59, 0.0  ;;  %v1111_v1 = vmul.f32 %v1553_v59, %v1553_v59 }
 0x160   : > { %1573 = dma.vmem_to_hbm [thread:$0]  (%p2262_p11), %s2098_s19, 1024, %s2112_s15, %s2136_s9, %s1794_s17, %s1794_s17, %s1795_s21   ;;  %v1094_v2 = vadd.f32 %v1093_v0, %v1092_v61  ;;  %v1123_v3 = vadd.f32 %v1122_v62, %v1121_v60 }
 0x161   : > { %s1136_s0 = scalar_lea.sflag [#allocation5], %s1944_s18  ;;  %s1689_s16 = scalar_lea.vmem %s2129_s11, 1024 }
 0x162   : > { %p1690_p8 = scmp.ne.s32.totalorder %s2129_s11, %s1689_s16  ;;  %s1796_s19 = smov [#allocation6]  }
 0x163   : > { %s1693_s15 = sshll.u32 %s1796_s19, 4  ;;  %s1694_s15 = int_to_ptr.vmem [resolvable:$false] %s1693_s15 }
 0x164   : > { %p1691_p10 = pnand %p1690_p8, %p2262_p11  ;;  %s1695_s20 = scalar_lea.vmem %s1694_s15, 2048 }
 0x165   : > { %p1696_p2 = scmp.lt.s32.totalorder %s2129_s11, %s1694_s15  ;;  %p1697_p4 = scmp.lt.s32.totalorder %s1695_s20, %s1689_s16 }
 0x166   : > { %p1692_p0 = pneg %p1691_p10 }
 0x167   : > { %p1698_p5 = por %p1697_p4, %p1696_p2 }
 0x169   : > { %p1699_p7 = pnand %p1698_p5, %p1692_p0 }
 0x16b   : > { %1702 = shalt.err (!%p1699_p7)
}
 0x16c   : > { %s1703_s8 = scalar_lea.hbm %s2127_s12, 1024  ;;  %s1707_s29 = scalar_lea.hbm %s2250_s5, 2048 }
 0x16d   : > { %p1704_p9 = scmp.ne.s32.totalorder %s2127_s12, %s1703_s8  ;;  %p1708_p6 = scmp.lt.u32.totalorder %s2127_s12, %s2250_s5 }
 0x16e   : > { %p1709_p12 = scmp.lt.u32.totalorder %s1707_s29, %s1703_s8  ;;  %p1711_p8 = scmp.lt.u32.totalorder %s1703_s8, %s2127_s12 }
 0x16f   : > { %p1705_p1 = pnand %p1704_p9, %p2262_p11 }
 0x170   : > { %p1710_p13 = por %p1709_p12, %p1708_p6 }
 0x171   : > { %p1706_p3 = pneg %p1705_p1 }
 0x172   : > { %p1712_p10 = por %p1711_p8, %p1710_p13 }
 0x174   : > { %p1713_p0 = pnand %p1712_p10, %p1706_p3 }
 0x176   : > { %1716 = shalt.err (!%p1713_p0)
}
 0x177   : > { %1572 = dma.vmem_to_hbm [thread:$0]  (%p2262_p11), %s2129_s11, 1024, %s2127_s12, %s1136_s0, %s1794_s17, %s1794_s17, %s1795_s21   ;;  %v1095_v4 = vsel %vm958_vm2, %v2115_v54, 0.0  ;;  %v1124_v5 = vsel %vm958_vm2, %v1111_v1, 0.0  ;;  %v1126_v8 = vsel %vm958_vm2, %v1112_v63, 0.0  ;;  %vm1103_vm3 = vcmask 57344  }
 0x178   : > { %v1096_v6 = vadd.f32 %v1095_v4, %v1094_v2  ;;  %v1125_v7 = vadd.f32 %v1124_v5, %v1123_v3  ;;  %s1332_s16 = sshll.u32 %s1944_s18, 1  ;;  %s1388_s11 = sshll.u32 %s1859_s28, 5 }
 0x179   : > { %s314_s12 = scalar_lea.vmem [#allocation9], %s1332_s16  ;;  %s2205_s20 = scalar_lea.hbm %s2252_s7, %s1388_s11 }
 0x17a   : > { %v1097_v9 = vrot.slane %v1096_v6, 4  ;;  %v1127_v10 = vadd.f32 %v1126_v8, %v1125_v7  ;;  %s1191_s17 = sshll.u32 %s314_s12, 4  ;;  %s1797_s8 = smov [#allocation9]   ;;  %s1192_s17 = int_to_ptr.vmem [resolvable:$true] %s1191_s17 }
 0x17b   : > { %s1717_s18 = scalar_lea.vmem %s1192_s17, 32  ;;  %s1721_s28 = sshll.u32 %s1797_s8, 4  ;;  %s1722_s28 = int_to_ptr.vmem [resolvable:$false] %s1721_s28 }
 0x17c   : > { %v1098_v11 = vadd.f32 %v1097_v9, %v1096_v6  ;;  %v1128_v12 = vrot.slane %v1127_v10, 4  ;;  %p1718_p2 = scmp.ne.s32.totalorder %s1192_s17, %s1717_s18  ;;  %s1723_s22 = scalar_lea.vmem %s1722_s28, 64 }
 0x17d   : > { %p1724_p7 = scmp.lt.s32.totalorder %s1192_s17, %s1722_s28  ;;  %p1725_p9 = scmp.lt.s32.totalorder %s1723_s22, %s1717_s18 }
 0x17e   : > { %v1099_v13 = vrot.slane %v1098_v11, 2  ;;  %v1129_v14 = vadd.f32 %v1128_v12, %v1127_v10  ;;  %p1719_p4 = pnand %p1718_p2, %p2262_p11 }
 0x17f   : > { %p1726_p1 = por %p1725_p9, %p1724_p7 }
 0x180   : > { %v1100_v15 = vadd.f32 %v1099_v13, %v1098_v11  ;;  %v1130_v16 = vrot.slane %v1129_v14, 2  ;;  %p1720_p5 = pneg %p1719_p4 }
 0x182   : > { %v1101_v17 = vrot.slane %v1100_v15, 1  ;;  %v1131_v18 = vadd.f32 %v1130_v16, %v1129_v14  ;;  %p1727_p3 = pnand %p1726_p1, %p1720_p5 }
 0x184   : > { %v1102_v19 = vadd.f32 %v1101_v17, %v1100_v15  ;;  %v1132_v20 = vrot.slane %v1131_v18, 1 }
 0x186   : > { %v1133_v21 = vadd.f32 %v1132_v20, %v1131_v18  ;;  %1104 = vst.msk [vmem:[%s314_s12] sm:$0x1] %vm1103_vm3, %v1102_v19 }
 0x188   : > { %1134 = vst.msk [vmem:[%s314_s12 + $0x1] sm:$0x1] %vm1103_vm3, %v1133_v21 }
 0x189   : > { %1730 = shalt.err (!%p1727_p3)
}
 0x18a   : > { %s1731_s23 = scalar_lea.hbm %s2205_s20, 32  ;;  %s1735_s15 = scalar_lea.hbm %s2252_s7, 64 }
 0x18b   : > { %p1732_p6 = scmp.ne.s32.totalorder %s2205_s20, %s1731_s23  ;;  %p1736_p8 = scmp.lt.u32.totalorder %s2205_s20, %s2252_s7 }
 0x18c   : > { %p1737_p10 = scmp.lt.u32.totalorder %s1735_s15, %s1731_s23  ;;  %p1739_p2 = scmp.lt.u32.totalorder %s1731_s23, %s2205_s20 }
 0x18d   : > { %p1733_p12 = pnand %p1732_p6, %p2262_p11 }
 0x18e   : > { %p1738_p0 = por %p1737_p10, %p1736_p8 }
 0x18f   : > { %p1734_p13 = pneg %p1733_p12 }
 0x190   : > { %p1740_p4 = por %p1739_p2, %p1738_p0 }
 0x192   : > { %p1741_p5 = pnand %p1740_p4, %p1734_p13 }
 0x194   : > { %1744 = shalt.err (!%p1741_p5)
}
 0x195   : > { %1574 = dma.vmem_to_hbm [thread:$0]  (%p2262_p11), %s1192_s17, 32, %s2205_s20, %s2136_s9  }
 0x196 PF: > { %s1203_s12 = sand.u32 1, %s1775_s24   ;;  %p2263_p7 = scmp.ne.s32.totalorder %s2259_s14, 0 }
 0x197   : > { %p2264_p9 = scmp.ge.s32.totalorder %s1787_s27, 2  ;;  %s1204_s21 = scalar_lea.sflag [#allocation5], %s1203_s12 }
 0x199   : > { %p1583_p1 = pnand %p2264_p9, %p2263_p7 }
 0x19b   : > { %1766 = dma.done.wait (!%p1583_p1), %s1204_s21, 1024  }
 0x19c   : > { %1768 = vsyncadd (!%p1583_p1), %s1204_s21, 4294966272  ;;  %s2265_s0 = sadd.s32 4294967294, %s1787_s27  }
 0x19d   : > { %s1212_s18 = sand.u32 1, %s2265_s0  }
 0x19e   : > { %s1213_s8 = scalar_lea.sflag [#allocation8], %s1212_s18 }
 0x19f   : > { %1770 = dma.done.wait (!%p1583_p1), %s1213_s8, 1056  }
 0x1a0   : > { %1772 = vsyncadd (!%p1583_p1), %s1213_s8, 4294966240  ;;  %p24_p11 = scmp.ge.s32.totalorder %s1863_s30, 4   ;;  %s2266_s24 = smov %s1779_s25 }
 0x1a1   : > { %s2267_s25 = smov %s1783_s26  ;;  %s2268_s26 = smov %s1875_s10 }
 0x1a2   : > { %s2269_s27 = smov %s1863_s30  ;;  %26 = sbr.rel (!%p24_p11) target bundleno = 9 (0x9), region = 121 }
 0x1a9   :  { %1227 = vsyncpa [#allocation4], 1 }
 0x1aa   :  { %1229 = vsyncpa [#allocation4 + $0x1], 1 }
 0x1ab   :  { %1230 = vsyncpa [#allocation5], 1 }
 0x1ac   :  { %1232 = vsyncpa [#allocation5 + $0x1], 1 }
 0x1ad   :  { %1233 = vsyncpa [#allocation8], 1 }
 0x1ae   :  { %1235 = vsyncpa [#allocation8 + $0x1], 1 }

</bundles_post_ra>
